<compile_context>
chip_gen: v6e
topology: v6e:2x2x1
jax: 0.10.0
libtpu: 0.0.40
codegen_flags: <defaults>
</compile_context>

<pallas_src>
import jax
import jax.numpy as jnp
from jax import lax
from jax.experimental import pallas as pl
from jax.experimental.pallas import tpu as pltpu

LANE = 128
SUBLANE = 8


def _round_up(v, m):
    return ((v + m - 1) // m) * m


# ------------------------------ Pallas kernel ------------------------------ #

def fused_gcn_link_kernel(src_idx_ref, dst_idx_ref, bfc_ref,
                          a_ref, x_ref, w1_ref, b1_ref, w2_ref, b2_ref,
                          wfc_ref, o_ref,
                          h2_buf, src_buf, dst_buf):
    """Fused GCN link-predictor forward.

    src_idx/dst_idx : (Ep,)    int32 edge endpoints (SMEM)
    bfc_ref         : (1, 1)   fc bias scalar (SMEM)
    a_ref           : (Np, Np) normalized adjacency, bf16, zero padded
    x_ref           : (Np, Fp) node features, bf16 (Fp = natural F rounded to 8)
    w1/b1           : (Fp, Hp) bf16 / (1, Hp) f32
    w2/b2           : (Hp, Hp) bf16 / (1, Hp) f32
    wfc_ref         : (1, Hp)  fc weight row, f32
    o_ref           : (1, Ep)  sigmoid link probabilities (lane-dense)
    h2_buf          : (Np, Hp) f32 scratch — node embeddings stay VMEM resident
    src_buf/dst_buf : (Ep, Hp) f32 scratch — gathered endpoint rows
    """
    a = a_ref[...]                                                  # bf16

    # GCNConv 1: relu(A @ (X @ W1) + b1)   (bf16 MXU, f32 accumulate)
    xw = jnp.dot(x_ref[...], w1_ref[...], preferred_element_type=jnp.float32)
    h = jnp.dot(a, xw.astype(jnp.bfloat16), preferred_element_type=jnp.float32)
    h = jnp.maximum(h + b1_ref[...], 0.0)                           # f32 VPU

    # GCNConv 2: A @ (h @ W2) + b2
    hw = jnp.dot(h.astype(jnp.bfloat16), w2_ref[...],
                 preferred_element_type=jnp.float32)
    h2 = jnp.dot(a, hw.astype(jnp.bfloat16),
                 preferred_element_type=jnp.float32) + b2_ref[...]

    # Node embeddings never leave VMEM; endpoint gather is index-based.
    h2_buf[...] = h2

    n_edges = src_buf.shape[0]            # static padded edge count

    def gather_row(e, carry):
        s = src_idx_ref[e]
        d = dst_idx_ref[e]
        src_buf[pl.ds(e, 1), :] = h2_buf[pl.ds(s, 1), :]
        dst_buf[pl.ds(e, 1), :] = h2_buf[pl.ds(d, 1), :]
        return carry

    lax.fori_loop(0, n_edges, gather_row, 0)

    # Edge scoring: VPU multiply (fc weight folded in), XLU transpose +
    # sublane reduction, lane-dense (1, Ep) output (unmasked stores).
    prod = src_buf[...] * dst_buf[...] * wfc_ref[...]               # (Ep, Hp)
    logits = jnp.sum(prod.T, axis=0, keepdims=True) + bfc_ref[0, 0]  # (1, Ep)
    o_ref[...] = jax.nn.sigmoid(logits).astype(o_ref.dtype)


# --------------------------------- Wrapper ---------------------------------- #

def build_norm_adj(edge_index, num_nodes):
    """Dense D^{-1/2} (A + I) D^{-1/2}, with A[dst, src] = 1 (PyG gcn_norm)."""
    src, dst = edge_index[0], edge_index[1]
    a = jnp.zeros((num_nodes, num_nodes), jnp.float32)
    a = a.at[dst, src].add(1.0)
    a = a + jnp.eye(num_nodes, dtype=jnp.float32)       # self loops keep deg >= 1
    deg = a.sum(axis=1)
    dinv = jax.lax.rsqrt(deg)
    return dinv[:, None] * a * dinv[None, :]


def _pad2(x, rows, cols, dtype=None):
    r, c = x.shape
    out = jnp.pad(x, ((0, rows - r), (0, cols - c)))
    return out.astype(dtype) if dtype is not None else out


def gcn_link_predictor(x, edge_index, params):
    n, f_in = x.shape
    h_dim = params["w1"].shape[1]
    num_edges = edge_index.shape[1]

    n_p = _round_up(n, LANE)
    f_p = _round_up(f_in, SUBLANE)       # natural feature width (no 16x blowup)
    h_p = _round_up(h_dim, LANE)
    e_p = _round_up(num_edges, LANE)

    # bf16 MXU operands; biases / fc stay f32 (added / multiplied on the VPU).
    a_p = _pad2(build_norm_adj(edge_index, n), n_p, n_p, jnp.bfloat16)
    x_p = _pad2(x, n_p, f_p, jnp.bfloat16)
    w1_p = _pad2(params["w1"], f_p, h_p, jnp.bfloat16)
    w2_p = _pad2(params["w2"], h_p, h_p, jnp.bfloat16)
    b1_p = _pad2(params["b1"], 1, h_p).astype(jnp.float32)
    b2_p = _pad2(params["b2"], 1, h_p).astype(jnp.float32)
    wfc_p = _pad2(params["w_fc"].T, 1, h_p).astype(jnp.float32)      # (1, Hp)
    bfc = params["b_fc"].reshape(1, 1).astype(jnp.float32)           # SMEM scalar

    pad_e = e_p - num_edges
    src_idx = jnp.pad(edge_index[0].astype(jnp.int32), (0, pad_e))   # pads -> row 0
    dst_idx = jnp.pad(edge_index[1].astype(jnp.int32), (0, pad_e))

    vmem = pl.BlockSpec(memory_space=pltpu.MemorySpace.VMEM)
    smem = pl.BlockSpec(memory_space=pltpu.MemorySpace.SMEM)

    probs = pl.pallas_call(
        fused_gcn_link_kernel,
        out_shape=jax.ShapeDtypeStruct((1, e_p), jnp.float32),
        in_specs=[smem, smem, smem] + [vmem] * 7,
        out_specs=vmem,
        scratch_shapes=[
            pltpu.VMEM((n_p, h_p), jnp.float32),   # h2 node embedding table
            pltpu.VMEM((e_p, h_p), jnp.float32),   # gathered src rows
            pltpu.VMEM((e_p, h_p), jnp.float32),   # gathered dst rows
        ],
    )(src_idx, dst_idx, bfc, a_p, x_p, w1_p, b1_p, w2_p, b2_p, wfc_p)

    return probs[0, :num_edges]                     # matches torch .squeeze()


def reference_forward(x, edge_index, params):
    a_norm = build_norm_adj(edge_index, x.shape[0])
    h = jax.nn.relu(a_norm @ (x @ params["w1"]) + params["b1"])
    h = a_norm @ (h @ params["w2"]) + params["b2"]
    e = h[edge_index[0]] * h[edge_index[1]]
    return jax.nn.sigmoid(e @ params["w_fc"] + params["b_fc"]).squeeze(-1)


# ----------------------------------- Main ------------------------------------ #

if __name__ == "__main__":
    INPUT_DIM = 8
    HIDDEN_DIM = 32
    NUM_NODES = 16

    key = jax.random.PRNGKey(0)
    k_x, k_w1, k_w2, k_wfc = jax.random.split(key, 4)

    # Node features.
    x = jax.random.normal(k_x, (NUM_NODES, INPUT_DIM), dtype=jnp.float32)

    # Deterministic small directed graph: ring + a few chords (E = 24 edges).
    ring_src = list(range(NUM_NODES))
    ring_dst = [(i + 1) % NUM_NODES for i in ring_src]
    chord_src = [0, 2, 4, 6, 8, 10, 12, 14]
    chord_dst = [5, 9, 13, 1, 3, 7, 11, 15]
    edge_index = jnp.array(
        [ring_src + chord_src, ring_dst + chord_dst], dtype=jnp.int32)

    # Deterministic parameter init (glorot-ish scaling; biases zero).
    params = {
        "w1": jax.random.normal(k_w1, (INPUT_DIM, HIDDEN_DIM), jnp.float32)
              * (1.0 / jnp.sqrt(INPUT_DIM)),
        "b1": jnp.zeros((1, HIDDEN_DIM), jnp.float32),
        "w2": jax.random.normal(k_w2, (HIDDEN_DIM, HIDDEN_DIM), jnp.float32)
              * (1.0 / jnp.sqrt(HIDDEN_DIM)),
        "b2": jnp.zeros((1, HIDDEN_DIM), jnp.float32),
        "w_fc": jax.random.normal(k_wfc, (HIDDEN_DIM, 1), jnp.float32)
                * (1.0 / jnp.sqrt(HIDDEN_DIM)),
        "b_fc": jnp.zeros((1, 1), jnp.float32),
    }

    out = jax.jit(gcn_link_predictor)(x, edge_index, params)
    out = jax.block_until_ready(out)

    ref = reference_forward(x, edge_index, params)
    assert out.shape == (edge_index.shape[1],)
    # bf16 MXU inputs with f32 accumulation vs a pure-f32 reference.
    assert jnp.allclose(out, ref, atol=5e-2, rtol=5e-2)

    print("KERNEL_OK")
</pallas_src>

<mosaic_0001>
module attributes {stable_mosaic.version = 11 : i64} {
  func.func private @main(%arg0: i32) attributes {dimension_semantics = [#tpu.dimension_semantics<core_parallel>], iteration_bounds = array<i64: 2>, tpu.core_type = #tpu.core_type<sc_scalar_subcore>, window_params = []} {
    return
  }
}

module attributes {stable_mosaic.version = 11 : i64} {
  func.func private @main(%arg0: i32) attributes {dimension_semantics = [#tpu.dimension_semantics<core_parallel>], iteration_bounds = array<i64: 2>, tpu.core_type = #tpu.core_type<sc_scalar_subcore>, window_params = []} {
    return
  }
}

module attributes {stable_mosaic.version = 11 : i64} {
  func.func @fused_gcn_link_kernel(%arg0: memref<128xi32, #tpu.memory_space<smem>>, %arg1: memref<128xi32, #tpu.memory_space<smem>>, %arg2: memref<1x1xf32, #tpu.memory_space<smem>>, %arg3: memref<128x128xbf16, #tpu.memory_space<vmem>>, %arg4: memref<128x8xbf16, #tpu.memory_space<vmem>>, %arg5: memref<8x128xbf16, #tpu.memory_space<vmem>>, %arg6: memref<1x128xf32, #tpu.memory_space<vmem>>, %arg7: memref<128x128xbf16, #tpu.memory_space<vmem>>, %arg8: memref<1x128xf32, #tpu.memory_space<vmem>>, %arg9: memref<1x128xf32, #tpu.memory_space<vmem>>, %arg10: memref<1x128xf32, #tpu.memory_space<vmem>>, %arg11: memref<128x128xf32, #tpu.memory_space<vmem>>, %arg12: memref<128x128xf32, #tpu.memory_space<vmem>>, %arg13: memref<128x128xf32, #tpu.memory_space<vmem>>) attributes {dimension_semantics = [], scalar_prefetch = 0 : i64, scratch_operands = 3 : i64, tpu.core_type = #tpu.core_type<tc>} {
    %c0 = arith.constant 0 : index
    %c0_0 = arith.constant 0 : index
    %0 = vector.load %arg3[%c0, %c0_0] : memref<128x128xbf16, #tpu.memory_space<vmem>>, vector<128x128xbf16>
    %c0_1 = arith.constant 0 : index
    %c0_2 = arith.constant 0 : index
    %1 = vector.load %arg4[%c0_1, %c0_2] : memref<128x8xbf16, #tpu.memory_space<vmem>>, vector<128x8xbf16>
    %c0_3 = arith.constant 0 : index
    %c0_4 = arith.constant 0 : index
    %2 = vector.load %arg5[%c0_3, %c0_4] : memref<8x128xbf16, #tpu.memory_space<vmem>>, vector<8x128xbf16>
    %cst = arith.constant dense<0.000000e+00> : vector<128x128xf32>
    %3 = tpu.matmul %1, %2, %cst {dimension_numbers = #tpu.dot_dimension_numbers<[1], [0], [0], [1], [0, 0, 1, 1], [], []>} : vector<128x8xbf16>, vector<8x128xbf16>, vector<128x128xf32> -> vector<128x128xf32>
    %4 = arith.truncf %3 : vector<128x128xf32> to vector<128x128xbf16>
    %cst_5 = arith.constant dense<0.000000e+00> : vector<128x128xf32>
    %5 = tpu.matmul %0, %4, %cst_5 {dimension_numbers = #tpu.dot_dimension_numbers<[1], [0], [0], [1], [0, 0, 1, 1], [], []>} : vector<128x128xbf16>, vector<128x128xbf16>, vector<128x128xf32> -> vector<128x128xf32>
    %c0_6 = arith.constant 0 : index
    %c0_7 = arith.constant 0 : index
    %6 = vector.load %arg6[%c0_6, %c0_7] : memref<1x128xf32, #tpu.memory_space<vmem>>, vector<1x128xf32>
    %7 = vector.broadcast %6 : vector<1x128xf32> to vector<128x128xf32>
    %8 = arith.addf %5, %7 : vector<128x128xf32>
    %cst_8 = arith.constant 0.000000e+00 : f32
    %9 = vector.broadcast %cst_8 : f32 to vector<128x128xf32>
    %10 = arith.maximumf %8, %9 : vector<128x128xf32>
    %11 = arith.truncf %10 : vector<128x128xf32> to vector<128x128xbf16>
    %c0_9 = arith.constant 0 : index
    %c0_10 = arith.constant 0 : index
    %12 = vector.load %arg7[%c0_9, %c0_10] : memref<128x128xbf16, #tpu.memory_space<vmem>>, vector<128x128xbf16>
    %cst_11 = arith.constant dense<0.000000e+00> : vector<128x128xf32>
    %13 = tpu.matmul %11, %12, %cst_11 {dimension_numbers = #tpu.dot_dimension_numbers<[1], [0], [0], [1], [0, 0, 1, 1], [], []>} : vector<128x128xbf16>, vector<128x128xbf16>, vector<128x128xf32> -> vector<128x128xf32>
    %14 = arith.truncf %13 : vector<128x128xf32> to vector<128x128xbf16>
    %cst_12 = arith.constant dense<0.000000e+00> : vector<128x128xf32>
    %15 = tpu.matmul %0, %14, %cst_12 {dimension_numbers = #tpu.dot_dimension_numbers<[1], [0], [0], [1], [0, 0, 1, 1], [], []>} : vector<128x128xbf16>, vector<128x128xbf16>, vector<128x128xf32> -> vector<128x128xf32>
    %c0_13 = arith.constant 0 : index
    %c0_14 = arith.constant 0 : index
    %16 = vector.load %arg8[%c0_13, %c0_14] : memref<1x128xf32, #tpu.memory_space<vmem>>, vector<1x128xf32>
    %17 = vector.broadcast %16 : vector<1x128xf32> to vector<128x128xf32>
    %18 = arith.addf %15, %17 : vector<128x128xf32>
    %c0_15 = arith.constant 0 : index
    %c0_16 = arith.constant 0 : index
    %19 = vector.load %arg11[%c0_15, %c0_16] : memref<128x128xf32, #tpu.memory_space<vmem>>, vector<128x128xf32>
    tpu.vector_store %arg11[%c0_15, %c0_16], %18 {strides = array<i32>} : memref<128x128xf32, #tpu.memory_space<vmem>>, vector<128x128xf32>,
    %c0_i32 = arith.constant 0 : i32
    %c128_i32 = arith.constant 128 : i32
    %20 = arith.addi %c0_i32, %c128_i32 : i32
    %c1_i32 = arith.constant 1 : i32
    scf.for %arg14 = %c0_i32 to %20 step %c1_i32  : i32 {
      %39 = arith.index_cast %arg14 : i32 to index
      %40 = memref.load %arg0[%39] : memref<128xi32, #tpu.memory_space<smem>>
      %41 = arith.index_cast %arg14 : i32 to index
      %42 = memref.load %arg1[%41] : memref<128xi32, #tpu.memory_space<smem>>
      %43 = arith.index_cast %40 : i32 to index
      %c0_30 = arith.constant 0 : index
      %44 = vector.load %arg11[%43, %c0_30] : memref<128x128xf32, #tpu.memory_space<vmem>>, vector<1x128xf32>
      %45 = arith.index_cast %arg14 : i32 to index
      %c0_31 = arith.constant 0 : index
      %46 = vector.load %arg12[%45, %c0_31] : memref<128x128xf32, #tpu.memory_space<vmem>>, vector<1x128xf32>
      tpu.vector_store %arg12[%45, %c0_31], %44 {strides = array<i32>} : memref<128x128xf32, #tpu.memory_space<vmem>>, vector<1x128xf32>,
      %47 = arith.index_cast %42 : i32 to index
      %c0_32 = arith.constant 0 : index
      %48 = vector.load %arg11[%47, %c0_32] : memref<128x128xf32, #tpu.memory_space<vmem>>, vector<1x128xf32>
      %49 = arith.index_cast %arg14 : i32 to index
      %c0_33 = arith.constant 0 : index
      %50 = vector.load %arg13[%49, %c0_33] : memref<128x128xf32, #tpu.memory_space<vmem>>, vector<1x128xf32>
      tpu.vector_store %arg13[%49, %c0_33], %48 {strides = array<i32>} : memref<128x128xf32, #tpu.memory_space<vmem>>, vector<1x128xf32>,
    }
    %c128_i32_17 = arith.constant 128 : i32
    %c0_18 = arith.constant 0 : index
    %c0_19 = arith.constant 0 : index
    %21 = vector.load %arg12[%c0_18, %c0_19] : memref<128x128xf32, #tpu.memory_space<vmem>>, vector<128x128xf32>
    %c0_20 = arith.constant 0 : index
    %c0_21 = arith.constant 0 : index
    %22 = vector.load %arg13[%c0_20, %c0_21] : memref<128x128xf32, #tpu.memory_space<vmem>>, vector<128x128xf32>
    %23 = arith.mulf %21, %22 : vector<128x128xf32>
    %c0_22 = arith.constant 0 : index
    %c0_23 = arith.constant 0 : index
    %24 = vector.load %arg9[%c0_22, %c0_23] : memref<1x128xf32, #tpu.memory_space<vmem>>, vector<1x128xf32>
    %25 = vector.broadcast %24 : vector<1x128xf32> to vector<128x128xf32>
    %26 = arith.mulf %23, %25 : vector<128x128xf32>
    %27 = tpu.transpose %26, [1, 0] : vector<128x128xf32> -> vector<128x128xf32>
    %cst_24 = arith.constant dense<0.000000e+00> : vector<128xf32>
    %28 = vector.multi_reduction <add>, %27, %cst_24 [0] : vector<128x128xf32> to vector<128xf32>
    %29 = vector.shape_cast %28 : vector<128xf32> to vector<1x128xf32>
    %c0_25 = arith.constant 0 : index
    %c0_26 = arith.constant 0 : index
    %30 = memref.load %arg2[%c0_25, %c0_26] : memref<1x1xf32, #tpu.memory_space<smem>>
    %31 = vector.broadcast %30 : f32 to vector<1x128xf32>
    %32 = arith.addf %29, %31 : vector<1x128xf32>
    %33 = arith.negf %32 : vector<1x128xf32>
    %34 = math.exp %33 : vector<1x128xf32>
    %cst_27 = arith.constant 1.000000e+00 : f32
    %35 = vector.broadcast %cst_27 : f32 to vector<1x128xf32>
    %36 = arith.addf %35, %34 : vector<1x128xf32>
    %37 = arith.divf %35, %36 : vector<1x128xf32>
    %c0_28 = arith.constant 0 : index
    %c0_29 = arith.constant 0 : index
    %38 = vector.load %arg10[%c0_28, %c0_29] : memref<1x128xf32, #tpu.memory_space<vmem>>, vector<1x128xf32>
    tpu.vector_store %arg10[%c0_28, %c0_29], %37 {strides = array<i32>} : memref<1x128xf32, #tpu.memory_space<vmem>>, vector<1x128xf32>,
    return
  }
}

</mosaic_0001>

<bundles_post_ra>
// kernel: gcn_link_predictor.1
= control target key start
LH: loop header
LB: loop body
LE: loop exit
PB: predicated region body
PF: predicated region fallthrough
CT: control target
= control target key end

     0   :  { %s1404_s0 = inlined_call_operand.vmem [shape: s32[128], index: 0, kind: input, shape index: {}]   ;;  %s1405_s1 = inlined_call_operand.vmem [shape: s32[128], index: 1, kind: input, shape index: {}]   ;;  %s1406_s2 = inlined_call_operand.<no memory space> [shape: f32[1,1], index: 2, kind: input, shape index: {}]   ;;  %s1407_s3 = inlined_call_operand.vmem [shape: bf16[128,128], index: 3, kind: input, shape index: {}]   ;;  %s1408_s4 = inlined_call_operand.vmem [shape: bf16[128,8], index: 4, kind: input, shape index: {}]   ;;  %s1409_s5 = inlined_call_operand.vmem [shape: bf16[8,128], index: 5, kind: input, shape index: {}]   ;;  %s1410_s6 = inlined_call_operand.vmem [shape: f32[1,128], index: 6, kind: input, shape index: {}]   ;;  %s1411_s7 = inlined_call_operand.vmem [shape: bf16[128,128], index: 7, kind: input, shape index: {}]   ;;  %s1412_s8 = inlined_call_operand.vmem [shape: f32[1,128], index: 8, kind: input, shape index: {}]   ;;  %s1413_s9 = inlined_call_operand.vmem [shape: f32[1,128], index: 9, kind: input, shape index: {}]   ;;  %s1414_s10 = inlined_call_operand.vmem [shape: f32[1,128], index: 10, kind: output, shape index: {}]  }
   0x1   :  { %15 = sst [smem:[#allocation5]] %s1406_s2 }
   0x2   :  { %16 = vsyncpa [#allocation7], 0  ;;  %s24_s17 = sshll.u32 %s1404_s0, 4  ;;  %s25_s17 = int_to_ptr.vmem [resolvable:$true] %s24_s17 }
   0x3   :  { %17 = vsyncpa [#allocation9], 0  ;;  %s34_s20 = sshll.u32 %s1405_s1, 4  ;;  %s1161_s21 = scalar_lea.vmem %s25_s17, 16  ;;  %s35_s20 = int_to_ptr.vmem [resolvable:$true] %s34_s20 }
   0x4   :  { %p1162_p0 = scmp.ne.s32.totalorder %s25_s17, %s1161_s21  ;;  %p1166_p1 = scmp.lt.s32.totalorder %s25_s17, %s25_s17 }
   0x5   :  { %p1167_p2 = scmp.lt.s32.totalorder %s1161_s21, %s1161_s21 }
   0x7   :  { %p1168_p3 = por %p1167_p2, %p1166_p1 }
   0x9   :  { %p1169_p4 = pnand %p1168_p3, %p1162_p0 }
   0xb   :  { %1172 = shalt.err (!%p1169_p4)
}
   0xc   :  { %s1197_s22 = smov [#allocation6]   ;;  %s1173_s2 = scalar_lea.vmem %s35_s20, 16 }
   0xd   :  { %27 = dma.vmem_to_smem %s25_s17, 16, %s1197_s22, [#allocation7]  }
   0xe   :  { %p1174_p5 = scmp.ne.s32.totalorder %s35_s20, %s1173_s2  ;;  %p1178_p6 = scmp.lt.s32.totalorder %s35_s20, %s35_s20 }
   0xf   :  { %p1179_p7 = scmp.lt.s32.totalorder %s1173_s2, %s1173_s2 }
  0x11   :  { %p1180_p8 = por %p1179_p7, %p1178_p6 }
  0x13   :  { %p1181_p9 = pnand %p1180_p8, %p1174_p5 }
  0x15   :  { %1184 = shalt.err (!%p1181_p9)
}
  0x16   :  { %s1198_s0 = smov [#allocation8]  }
  0x17   :  { %37 = dma.vmem_to_smem %s35_s20, 16, %s1198_s0, [#allocation9]  }
  0x18   :  { %1189 = dma.done.wait [#allocation7], 16  }
  0x19   :  { %1190 = vsyncadd [#allocation7], 4294967280 }
  0x1a   :  { %1191 = dma.done.wait [#allocation9], 16  }
  0x1b   :  { %1192 = vsyncadd [#allocation9], 4294967280 }
  0x1c   :  { %60 = sfence }
  0x1d   :  { %v94_v0 = vld [vmem:[%s1409_s5] sm:$0xf]  ;;  %vm160_vm0 = vcmask 1043456   ;;  %vm135_vm1 = vcmask 64512   ;;  %v1134_v3 = vld [vmem:[%s1408_s4 + $0x8] sm:$0xff]   ;;  %v1135_v4 = vld [vmem:[%s1408_s4 + $0x10] sm:$0xff]  }
  0x1e   :  { %v1133_v1 = vld [vmem:[%s1408_s4] sm:$0xff]   ;;  %1122 = vmatprep.subr.msk.bf16.mxu0 %vm160_vm0, %v94_v0  ;;  %v162_v2 = vsel %vm160_vm0, %v94_v0, 0  ;;  %v1136_v5 = vld [vmem:[%s1408_s4 + $0x18] sm:$0xff]   ;;  %v1138_v7 = vld [vmem:[%s1408_s4 + $0x28] sm:$0xff]  }
  0x1f   :  { %993 = vmatpush3.bf16.msra.mxu0 %v162_v2  ;;  %994 = vmatprep.mubr.msk.bf16.mxu0 %vm135_vm1, %v1133_v1  ;;  %v1137_v6 = vld [vmem:[%s1408_s4 + $0x20] sm:$0xff]   ;;  %v1139_v8 = vld [vmem:[%s1408_s4 + $0x30] sm:$0xff]   ;;  %v1140_v9 = vld [vmem:[%s1408_s4 + $0x38] sm:$0xff]  }
  0x20   :  { %v1301_v10 = vld [vmem:[%s1407_s3] sm:$0xff]   ;;  %v1149_v11 = vld [vmem:[%s1411_s7 + $0x38] sm:$0xff]   ;;  %v1150_v12 = vld [vmem:[%s1411_s7 + $0x30] sm:$0xff]  }
  0x21   :  { %1026 = vmatprep.mubr.bf16.mxu1 %v1301_v10  ;;  %1042 = vmatprep.subr.bf16.mxu0 %v1149_v11  ;;  %v1151_v13 = vld [vmem:[%s1411_s7 + $0x28] sm:$0xff]   ;;  %v1152_v14 = vld [vmem:[%s1411_s7 + $0x20] sm:$0xff]   ;;  %v1153_v15 = vld [vmem:[%s1411_s7 + $0x18] sm:$0xff]  }
  0x22   :  { %995 = vmatmul.mubr.msk.bf16.vlgmr.msra.gmra.mxu0 %vm135_vm1, %v1134_v3  ;;  %v1322_v40 = vld [vmem:[%s1407_s3 + $0x8] sm:$0xff]   ;;  %v1143_v41 = vld [vmem:[%s1407_s3 + $0x10] sm:$0xff]   ;;  %v1331_v42 = vld [vmem:[%s1407_s3 + $0x18] sm:$0xff]  }
  0x23   :  { %998 = vmatprep.mubr.msk.bf16.mxu0 %vm135_vm1, %v1135_v4  ;;  %1043 = vmatpush3.bf16.msra.mxu0 %v1149_v11  ;;  %v1336_v43 = vld [vmem:[%s1407_s3 + $0x20] sm:$0xff]   ;;  %v1343_v44 = vld [vmem:[%s1407_s3 + $0x28] sm:$0xff]   ;;  %v1348_v45 = vld [vmem:[%s1407_s3 + $0x30] sm:$0xff]  }
  0x24   :  { %1044 = vmatprep.subr.bf16.mxu0 %v1150_v12  ;;  %v1355_v46 = vld [vmem:[%s1407_s3 + $0x38] sm:$0xff]   ;;  %v1154_v47 = vld [vmem:[%s1411_s7 + $0x10] sm:$0xff]   ;;  %v1155_v48 = vld [vmem:[%s1411_s7 + $0x8] sm:$0xff]  }
  0x25   :  { %v1156_v49 = vld [vmem:[%s1411_s7] sm:$0xff]  }
  0x26   :  { %v915_v52 = vld [vmem:[%s1410_s6] ss:$0 sm:$0xff] }
  0x27   :  { %1045 = vmatpush3.bf16.msra.mxu0 %v1150_v12 }
  0x28   :  { %1046 = vmatprep.subr.bf16.mxu0 %v1151_v13 }
  0x2a   :  { %999 = vmatmul.mubr.msk.bf16.gmra.mxu0 %vm135_vm1, %v1136_v5 }
  0x2b   :  { %1002 = vmatprep.mubr.msk.bf16.mxu0 %vm135_vm1, %v1137_v6  ;;  %1047 = vmatpush3.bf16.msra.mxu0 %v1151_v13 }
  0x2c   :  { %1048 = vmatprep.subr.bf16.mxu0 %v1152_v14 }
  0x2f   :  { %1049 = vmatpush3.bf16.msra.mxu0 %v1152_v14 }
  0x30   :  { %1050 = vmatprep.subr.bf16.mxu0 %v1153_v15 }
  0x32   :  { %1003 = vmatmul.mubr.msk.bf16.gmra.mxu0 %vm135_vm1, %v1138_v7 }
  0x33   :  { %1006 = vmatprep.mubr.msk.bf16.mxu0 %vm135_vm1, %v1139_v8  ;;  %1051 = vmatpush3.bf16.msra.mxu0 %v1153_v15 }
  0x34   :  { %1052 = vmatprep.subr.bf16.mxu0 %v1154_v47 }
  0x37   :  { %1053 = vmatpush3.bf16.msra.mxu0 %v1154_v47 }
  0x38   :  { %1054 = vmatprep.subr.bf16.mxu0 %v1155_v48 }
  0x3a   :  { %1007 = vmatmul.mubr.msk.bf16.gmra.mxu0 %vm135_vm1, %v1140_v9 }
  0x3b   :  { %1055 = vmatpush3.bf16.msra.mxu0 %v1155_v48 }
  0x3c   :  { %1056 = vmatprep.subr.bf16.mxu0 %v1156_v49 }
  0x3f   :  { %1057 = vmatpush3.bf16.msra.mxu0 %v1156_v49 }
  0xe2   :  { %v996_v16 = vpop.f32.mrf.mxu0 }
  0xe4   :  { %v198_v17 = vpop.f32.mrf.mxu0 }
  0xe6   :  { %v997_v18 = vpop.f32.mrf.mxu0 }
  0xe7   :  { %v262_v38 = vpack.c.bf16 %v997_v18, %v996_v16 }
  0xe8   :  { %v201_v19 = vpop.f32.mrf.mxu0 }
  0xe9   :  { %v261_v39 = vpack.c.bf16 %v201_v19, %v198_v17 }
  0xea   :  { %v1000_v20 = vpop.f32.mrf.mxu0 }
  0xec   :  { %v214_v21 = vpop.f32.mrf.mxu0 }
  0xee   :  { %v1001_v22 = vpop.f32.mrf.mxu0 }
  0xef   :  { %v264_v36 = vpack.c.bf16 %v1001_v22, %v1000_v20 }
  0xf0   :  { %v217_v23 = vpop.f32.mrf.mxu0 }
  0xf1   :  { %v263_v37 = vpack.c.bf16 %v217_v23, %v214_v21 }
  0xf2   :  { %v1004_v24 = vpop.f32.mrf.mxu0 }
  0xf4   :  { %v230_v25 = vpop.f32.mrf.mxu0 }
  0xf6   :  { %v1005_v26 = vpop.f32.mrf.mxu0 }
  0xf7   :  { %v266_v34 = vpack.c.bf16 %v1005_v26, %v1004_v24 }
  0xf8   :  { %v233_v27 = vpop.f32.mrf.mxu0 }
  0xf9   :  { %v265_v35 = vpack.c.bf16 %v233_v27, %v230_v25 }
  0xfa   :  { %v1008_v28 = vpop.f32.mrf.mxu0 }
  0xfc   :  { %v246_v29 = vpop.f32.mrf.mxu0 }
  0xfe   :  { %v1009_v30 = vpop.f32.mrf.mxu0 }
  0xff   :  { %v268_v31 = vpack.c.bf16 %v1009_v30, %v1008_v28 }
 0x100   :  { %v249_v32 = vpop.f32.mrf.mxu0 }
 0x101   :  { %v267_v33 = vpack.c.bf16 %v249_v32, %v246_v29  ;;  %1010 = vmatprep.subr.bf16.mxu1 %v268_v31 }
 0x102   :  { %1011 = vmatpush3.bf16.msra.mxu1 %v268_v31 }
 0x103   :  { %1012 = vmatprep.subr.bf16.mxu1 %v267_v33 }
 0x106   :  { %1013 = vmatpush3.bf16.msra.mxu1 %v267_v33 }
 0x107   :  { %1014 = vmatprep.subr.bf16.mxu1 %v266_v34 }
 0x10a   :  { %1015 = vmatpush3.bf16.msra.mxu1 %v266_v34 }
 0x10b   :  { %1016 = vmatprep.subr.bf16.mxu1 %v265_v35 }
 0x10e   :  { %1017 = vmatpush3.bf16.msra.mxu1 %v265_v35 }
 0x10f   :  { %1018 = vmatprep.subr.bf16.mxu1 %v264_v36 }
 0x112   :  { %1019 = vmatpush3.bf16.msra.mxu1 %v264_v36 }
 0x113   :  { %1020 = vmatprep.subr.bf16.mxu1 %v263_v37 }
 0x116   :  { %1021 = vmatpush3.bf16.msra.mxu1 %v263_v37 }
 0x117   :  { %1022 = vmatprep.subr.bf16.mxu1 %v262_v38 }
 0x11a   :  { %1023 = vmatpush3.bf16.msra.mxu1 %v262_v38 }
 0x11b   :  { %1024 = vmatprep.subr.bf16.mxu1 %v261_v39 }
 0x11e   :  { %1025 = vmatpush3.bf16.msra.mxu1 %v261_v39 }
 0x121   :  { %1027 = vmatmul.mubr.bf16.vlgmr.msra.gmra.mxu1 %v1322_v40 }
 0x122   :  { %1030 = vmatprep.mubr.bf16.mxu1 %v1143_v41 }
 0x129   :  { %1031 = vmatmul.mubr.bf16.gmra.mxu1 %v1331_v42 }
 0x12a   :  { %1034 = vmatprep.mubr.bf16.mxu1 %v1336_v43 }
 0x131   :  { %1035 = vmatmul.mubr.bf16.gmra.mxu1 %v1343_v44 }
 0x132   :  { %1038 = vmatprep.mubr.bf16.mxu1 %v1348_v45 }
 0x139   :  { %1039 = vmatmul.mubr.bf16.gmra.mxu1 %v1355_v46 }
 0x13a   :  { %1094 = vmatprep.mubr.bf16.mxu1 %v1143_v41 }
 0x1e1   :  { %v1028_v50 = vpop.f32.mrf.mxu1 }
 0x1e2   :  { %v367_v56 = vadd.f32 %v1028_v50, %v915_v52 }
 0x1e3   :  { %v358_v51 = vpop.f32.mrf.mxu1 }
 0x1e4   :  { %v359_v54 = vadd.f32 %v915_v52, %v358_v51  ;;  %v423_v63 = vmax.f32 %v367_v56, 0.0 }
 0x1e5   :  { %v1029_v53 = vpop.f32.mrf.mxu1 }
 0x1e6   :  { %v370_v55 = vadd.f32 %v1029_v53, %v915_v52  ;;  %v421_v61 = vmax.f32 %v359_v54, 0.0 }
 0x1e7   :  { %v361_v57 = vpop.f32.mrf.mxu1 }
 0x1e8   :  { %v362_v58 = vadd.f32 %v915_v52, %v361_v57  ;;  %v424_v59 = vmax.f32 %v370_v55, 0.0 }
 0x1e9   :  { %v1032_v60 = vpop.f32.mrf.mxu1 }
 0x1ea   :  { %v422_v62 = vmax.f32 %v362_v58, 0.0  ;;  %v438_v2 = vpack.c.bf16 %v424_v59, %v423_v63  ;;  %v383_v6 = vadd.f32 %v1032_v60, %v915_v52 }
 0x1eb   :  { %v374_v0 = vpop.f32.mrf.mxu1 }
 0x1ec   :  { %v437_v1 = vpack.c.bf16 %v422_v62, %v421_v61  ;;  %v375_v4 = vadd.f32 %v915_v52, %v374_v0  ;;  %v427_v14 = vmax.f32 %v383_v6, 0.0 }
 0x1ed   :  { %v1033_v3 = vpop.f32.mrf.mxu1 }
 0x1ee   :  { %v386_v5 = vadd.f32 %v1033_v3, %v915_v52  ;;  %1058 = vmatprep.mubr.bf16.mxu0 %v437_v1  ;;  %v425_v12 = vmax.f32 %v375_v4, 0.0 }
 0x1ef   :  { %v377_v7 = vpop.f32.mrf.mxu1  ;;  %1059 = vmatmul.mubr.bf16.vlgmr.msra.gmra.mxu0 %v438_v2 }
 0x1f0   :  { %v378_v8 = vadd.f32 %v915_v52, %v377_v7  ;;  %v428_v9 = vmax.f32 %v386_v5, 0.0 }
 0x1f1   :  { %v1036_v11 = vpop.f32.mrf.mxu1 }
 0x1f2   :  { %v426_v13 = vmax.f32 %v378_v8, 0.0  ;;  %v440_v17 = vpack.c.bf16 %v428_v9, %v427_v14  ;;  %v399_v21 = vadd.f32 %v1036_v11, %v915_v52  ;;  %v932_v9 = vld [vmem:[%s1412_s8] ss:$0 sm:$0xff]  ;;  %s1193_s8 = smov 0  }
 0x1f3   :  { %v390_v15 = vpop.f32.mrf.mxu1 }
 0x1f4   :  { %v439_v16 = vpack.c.bf16 %v426_v13, %v425_v12  ;;  %v391_v19 = vadd.f32 %v915_v52, %v390_v15  ;;  %v431_v28 = vmax.f32 %v399_v21, 0.0 }
 0x1f5   :  { %v1037_v18 = vpop.f32.mrf.mxu1 }
 0x1f6   :  { %v402_v20 = vadd.f32 %v1037_v18, %v915_v52  ;;  %1062 = vmatprep.mubr.bf16.mxu0 %v439_v16  ;;  %v429_v26 = vmax.f32 %v391_v19, 0.0 }
 0x1f7   :  { %v393_v22 = vpop.f32.mrf.mxu1  ;;  %1063 = vmatmul.mubr.bf16.gmra.mxu0 %v440_v17 }
 0x1f8   :  { %v394_v23 = vadd.f32 %v915_v52, %v393_v22  ;;  %v432_v24 = vmax.f32 %v402_v20, 0.0 }
 0x1f9   :  { %v1040_v25 = vpop.f32.mrf.mxu1 }
 0x1fa   :  { %v430_v27 = vmax.f32 %v394_v23, 0.0  ;;  %v442_v31 = vpack.c.bf16 %v432_v24, %v431_v28  ;;  %v415_v35 = vadd.f32 %v1040_v25, %v915_v52 }
 0x1fb   :  { %v406_v29 = vpop.f32.mrf.mxu1 }
 0x1fc   :  { %v441_v30 = vpack.c.bf16 %v430_v27, %v429_v26  ;;  %v407_v33 = vadd.f32 %v915_v52, %v406_v29  ;;  %v435_v47 = vmax.f32 %v415_v35, 0.0 }
 0x1fd   :  { %v1041_v32 = vpop.f32.mrf.mxu1 }
 0x1fe   :  { %v418_v34 = vadd.f32 %v1041_v32, %v915_v52  ;;  %1066 = vmatprep.mubr.bf16.mxu0 %v441_v30  ;;  %v433_v39 = vmax.f32 %v407_v33, 0.0 }
 0x1ff   :  { %v409_v36 = vpop.f32.mrf.mxu1  ;;  %1067 = vmatmul.mubr.bf16.gmra.mxu0 %v442_v31 }
 0x200   :  { %v410_v37 = vadd.f32 %v915_v52, %v409_v36  ;;  %v436_v38 = vmax.f32 %v418_v34, 0.0 }
 0x202   :  { %v434_v41 = vmax.f32 %v410_v37, 0.0  ;;  %v444_v49 = vpack.c.bf16 %v436_v38, %v435_v47 }
 0x204   :  { %v443_v48 = vpack.c.bf16 %v434_v41, %v433_v39 }
 0x206   :  { %1070 = vmatprep.mubr.bf16.mxu0 %v443_v48 }
 0x207   :  { %1071 = vmatmul.mubr.bf16.gmra.mxu0 %v444_v49 }
 0x208   :  { %1090 = vmatprep.mubr.bf16.mxu0 %v1301_v10 }
 0x2af   :  { %v1060_v50 = vpop.f32.mrf.mxu0 }
 0x2b1   :  { %v543_v51 = vpop.f32.mrf.mxu0 }
 0x2b3   :  { %v1061_v53 = vpop.f32.mrf.mxu0 }
 0x2b4   :  { %v607_v7 = vpack.c.bf16 %v1061_v53, %v1060_v50 }
 0x2b5   :  { %v546_v54 = vpop.f32.mrf.mxu0 }
 0x2b6   :  { %v606_v8 = vpack.c.bf16 %v546_v54, %v543_v51 }
 0x2b7   :  { %v1064_v55 = vpop.f32.mrf.mxu0 }
 0x2b9   :  { %v559_v56 = vpop.f32.mrf.mxu0 }
 0x2bb   :  { %v1065_v57 = vpop.f32.mrf.mxu0 }
 0x2bc   :  { %v609_v5 = vpack.c.bf16 %v1065_v57, %v1064_v55 }
 0x2bd   :  { %v562_v58 = vpop.f32.mrf.mxu0 }
 0x2be   :  { %v608_v6 = vpack.c.bf16 %v562_v58, %v559_v56 }
 0x2bf   :  { %v1068_v59 = vpop.f32.mrf.mxu0 }
 0x2c1   :  { %v575_v52 = vpop.f32.mrf.mxu0 }
 0x2c3   :  { %v1069_v60 = vpop.f32.mrf.mxu0 }
 0x2c4   :  { %v611_v10 = vpack.c.bf16 %v1069_v60, %v1068_v59 }
 0x2c5   :  { %v578_v61 = vpop.f32.mrf.mxu0 }
 0x2c6   :  { %v610_v4 = vpack.c.bf16 %v578_v61, %v575_v52 }
 0x2c7   :  { %v1072_v62 = vpop.f32.mrf.mxu0 }
 0x2c9   :  { %v591_v63 = vpop.f32.mrf.mxu0 }
 0x2cb   :  { %v1073_v0 = vpop.f32.mrf.mxu0 }
 0x2cc   :  { %v613_v1 = vpack.c.bf16 %v1073_v0, %v1072_v62 }
 0x2cd   :  { %v594_v2 = vpop.f32.mrf.mxu0 }
 0x2ce   :  { %v612_v3 = vpack.c.bf16 %v594_v2, %v591_v63  ;;  %1074 = vmatprep.subr.bf16.mxu0 %v613_v1  ;;  %1106 = vmatprep.subr.bf16.mxu1 %v613_v1 }
 0x2cf   :  { %1075 = vmatpush3.bf16.msra.mxu0 %v613_v1  ;;  %1114 = vmatpush3.bf16.msra.mxu1 %v613_v1 }
 0x2d0   :  { %1076 = vmatprep.subr.bf16.mxu0 %v612_v3  ;;  %1107 = vmatprep.subr.bf16.mxu1 %v612_v3 }
 0x2d3   :  { %1077 = vmatpush3.bf16.msra.mxu0 %v612_v3  ;;  %1115 = vmatpush3.bf16.msra.mxu1 %v612_v3 }
 0x2d4   :  { %1078 = vmatprep.subr.bf16.mxu0 %v611_v10  ;;  %1108 = vmatprep.subr.bf16.mxu1 %v611_v10 }
 0x2d7   :  { %1079 = vmatpush3.bf16.msra.mxu0 %v611_v10  ;;  %1116 = vmatpush3.bf16.msra.mxu1 %v611_v10 }
 0x2d8   :  { %1080 = vmatprep.subr.bf16.mxu0 %v610_v4  ;;  %1109 = vmatprep.subr.bf16.mxu1 %v610_v4 }
 0x2db   :  { %1081 = vmatpush3.bf16.msra.mxu0 %v610_v4  ;;  %1117 = vmatpush3.bf16.msra.mxu1 %v610_v4 }
 0x2dc   :  { %1082 = vmatprep.subr.bf16.mxu0 %v609_v5  ;;  %1110 = vmatprep.subr.bf16.mxu1 %v609_v5 }
 0x2df   :  { %1083 = vmatpush3.bf16.msra.mxu0 %v609_v5  ;;  %1118 = vmatpush3.bf16.msra.mxu1 %v609_v5 }
 0x2e0   :  { %1084 = vmatprep.subr.bf16.mxu0 %v608_v6  ;;  %1111 = vmatprep.subr.bf16.mxu1 %v608_v6 }
 0x2e3   :  { %1085 = vmatpush3.bf16.msra.mxu0 %v608_v6  ;;  %1119 = vmatpush3.bf16.msra.mxu1 %v608_v6 }
 0x2e4   :  { %1086 = vmatprep.subr.bf16.mxu0 %v607_v7  ;;  %1112 = vmatprep.subr.bf16.mxu1 %v607_v7 }
 0x2e7   :  { %1087 = vmatpush3.bf16.msra.mxu0 %v607_v7  ;;  %1120 = vmatpush3.bf16.msra.mxu1 %v607_v7 }
 0x2e8   :  { %1088 = vmatprep.subr.bf16.mxu0 %v606_v8  ;;  %1113 = vmatprep.subr.bf16.mxu1 %v606_v8 }
 0x2eb   :  { %1089 = vmatpush3.bf16.msra.mxu0 %v606_v8  ;;  %1121 = vmatpush3.bf16.msra.mxu1 %v606_v8 }
 0x2ee   :  { %1095 = vmatmul.mubr.bf16.vlgmr.msra.gmra.mxu1 %v1331_v42  ;;  %1091 = vmatmul.mubr.bf16.vlgmr.msra.gmra.mxu0 %v1322_v40 }
 0x2ef   :  { %1098 = vmatprep.mubr.bf16.mxu1 %v1336_v43 }
 0x2f6   :  { %1099 = vmatmul.mubr.bf16.gmra.mxu1 %v1343_v44 }
 0x2f7   :  { %1102 = vmatprep.mubr.bf16.mxu1 %v1348_v45 }
 0x2fe   :  { %1103 = vmatmul.mubr.bf16.gmra.mxu1 %v1355_v46 }
 0x3ae   :  { %v1096_v11 = vpop.f32.mrf.mxu1  ;;  %v1092_v12 = vpop.f32.mrf.mxu0 }
 0x3af   :  { %v680_v13 = vadd.f32 %v1096_v11, %v932_v9  ;;  %v664_v14 = vadd.f32 %v1092_v12, %v932_v9 }
 0x3b0   :  { %v671_v15 = vpop.f32.mrf.mxu1  ;;  %v655_v42 = vpop.f32.mrf.mxu0 }
 0x3b1   :  { %724 = vst [vmem:[#allocation2 + $0x30] sm:$0xff] %v680_v13  ;;  %v672_v40 = vadd.f32 %v932_v9, %v671_v15  ;;  %720 = vst [vmem:[#allocation2 + $0x10] sm:$0xff] %v664_v14  ;;  %v656_v43 = vadd.f32 %v932_v9, %v655_v42 }
 0x3b2   :  { %v1097_v16 = vpop.f32.mrf.mxu1  ;;  %v1093_v44 = vpop.f32.mrf.mxu0 }
 0x3b3   :  { %722 = vst [vmem:[#allocation2 + $0x20] sm:$0xff] %v672_v40  ;;  %v683_v45 = vadd.f32 %v1097_v16, %v932_v9  ;;  %718 = vst [vmem:[#allocation2] sm:$0xff] %v656_v43  ;;  %v667_v46 = vadd.f32 %v1093_v44, %v932_v9 }
 0x3b4   :  { %v674_v17 = vpop.f32.mrf.mxu1  ;;  %v658_v18 = vpop.f32.mrf.mxu0 }
 0x3b5   :  { %725 = vst [vmem:[#allocation2 + $0x38] sm:$0xff] %v683_v45  ;;  %v675_v19 = vadd.f32 %v932_v9, %v674_v17  ;;  %721 = vst [vmem:[#allocation2 + $0x18] sm:$0xff] %v667_v46  ;;  %v659_v20 = vadd.f32 %v932_v9, %v658_v18 }
 0x3b6   :  { %v1100_v21 = vpop.f32.mrf.mxu1 }
 0x3b7   :  { %723 = vst [vmem:[#allocation2 + $0x28] sm:$0xff] %v675_v19  ;;  %v696_v22 = vadd.f32 %v1100_v21, %v932_v9  ;;  %719 = vst [vmem:[#allocation2 + $0x8] sm:$0xff] %v659_v20 }
 0x3b8   :  { %v687_v23 = vpop.f32.mrf.mxu1 }
 0x3b9   :  { %728 = vst [vmem:[#allocation2 + $0x50] sm:$0xff] %v696_v22  ;;  %v688_v24 = vadd.f32 %v932_v9, %v687_v23 }
 0x3ba   :  { %v1101_v25 = vpop.f32.mrf.mxu1 }
 0x3bb   :  { %726 = vst [vmem:[#allocation2 + $0x40] sm:$0xff] %v688_v24  ;;  %v699_v26 = vadd.f32 %v1101_v25, %v932_v9 }
 0x3bc   :  { %v690_v27 = vpop.f32.mrf.mxu1 }
 0x3bd   :  { %729 = vst [vmem:[#allocation2 + $0x58] sm:$0xff] %v699_v26  ;;  %v691_v28 = vadd.f32 %v932_v9, %v690_v27 }
 0x3be   :  { %v1104_v29 = vpop.f32.mrf.mxu1 }
 0x3bf   :  { %727 = vst [vmem:[#allocation2 + $0x48] sm:$0xff] %v691_v28  ;;  %v712_v30 = vadd.f32 %v1104_v29, %v932_v9 }
 0x3c0   :  { %v703_v31 = vpop.f32.mrf.mxu1 }
 0x3c1   :  { %732 = vst [vmem:[#allocation2 + $0x70] sm:$0xff] %v712_v30  ;;  %v704_v32 = vadd.f32 %v932_v9, %v703_v31 }
 0x3c2   :  { %v1105_v33 = vpop.f32.mrf.mxu1 }
 0x3c3   :  { %730 = vst [vmem:[#allocation2 + $0x60] sm:$0xff] %v704_v32  ;;  %v715_v34 = vadd.f32 %v1105_v33, %v932_v9 }
 0x3c4   :  { %v706_v35 = vpop.f32.mrf.mxu1 }
 0x3c5   :  { %733 = vst [vmem:[#allocation2 + $0x78] sm:$0xff] %v715_v34  ;;  %v707_v36 = vadd.f32 %v932_v9, %v706_v35 }
 0x3c7   :  { %731 = vst [vmem:[#allocation2 + $0x68] sm:$0xff] %v707_v36 }
 0x3c8 LB: > { %s740_s23 = sld [smem:[#allocation6 + %s1195_s8]]  ;;  %s744_s26 = scalar_lea.vmem [#allocation3], %s1195_s8  ;;  %s1195_s8 = sphi %s1193_s8, %s739_s8  }
 0x3c9   : > { %s741_s24 = sld [smem:[#allocation8 + %s1195_s8]]  ;;  %s748_s28 = scalar_lea.vmem [#allocation4], %s1195_s8 }
 0x3ca   : > { %s739_s8 = sadd.s32 1, %s1195_s8  }
 0x3cb   : > { %p736_p10 = scmp.ge.s32.totalorder %s739_s8, 128  }
 0x3cc   :  { %v1383_v47 = vld [vmem:[%s1413_s9] ss:$0 sm:$0xff] (%p736_p10)  ;;  %s874_s9 = sld [smem:[#allocation5]] (%p736_p10) }
 0x3cd   :  { %738 = sbr.rel (!%p736_p10) target bundleno = 968 (0x3c8), region = 79 }
 0x3ce   : > { %s742_s25 = scalar_lea.vmem [#allocation2], %s740_s23 }
 0x3cf   : > { %v743_v37 = vld [vmem:[%s742_s25] sm:$0x1]  ;;  %s746_s27 = scalar_lea.vmem [#allocation2], %s741_s24 }
 0x3d0   : > { %745 = vst [vmem:[%s744_s26] sm:$0x1] %v743_v37  ;;  %v747_v38 = vld [vmem:[%s746_s27] sm:$0x1] }
 0x3d1   : > { %749 = vst [vmem:[%s748_s28] sm:$0x1] %v747_v38 }
 0x3d7   :  { %v750_v39 = vld [vmem:[#allocation3] sm:$0xff]  ;;  %v751_v49 = vld [vmem:[#allocation3 + $0x8] sm:$0xff]  ;;  %v752_v53 = vld [vmem:[#allocation3 + $0x10] sm:$0xff] }
 0x3d8   :  { %v766_v41 = vld [vmem:[#allocation4] sm:$0xff]  ;;  %v767_v50 = vld [vmem:[#allocation4 + $0x8] sm:$0xff]  ;;  %v768_v54 = vld [vmem:[#allocation4 + $0x10] sm:$0xff] }
 0x3d9   :  { %v782_v48 = vmul.f32 %v766_v41, %v750_v39  ;;  %v783_v51 = vmul.f32 %v767_v50, %v751_v49  ;;  %v784_v57 = vmul.f32 %v768_v54, %v752_v53  ;;  %v753_v58 = vld [vmem:[#allocation3 + $0x18] sm:$0xff]  ;;  %v754_v61 = vld [vmem:[#allocation3 + $0x20] sm:$0xff]  ;;  %v755_v1 = vld [vmem:[#allocation3 + $0x28] sm:$0xff] }
 0x3da   :  { %v769_v59 = vld [vmem:[#allocation4 + $0x18] sm:$0xff]  ;;  %v770_v62 = vld [vmem:[#allocation4 + $0x20] sm:$0xff]  ;;  %v771_v2 = vld [vmem:[#allocation4 + $0x28] sm:$0xff] }
 0x3db   :  { %v805_v55 = vmul.f32 %v1383_v47, %v782_v48  ;;  %v806_v56 = vmul.f32 %v1383_v47, %v783_v51  ;;  %v807_v52 = vmul.f32 %v1383_v47, %v784_v57  ;;  %v785_v60 = vmul.f32 %v769_v59, %v753_v58  ;;  %v756_v4 = vld [vmem:[#allocation3 + $0x30] sm:$0xff]  ;;  %v757_v8 = vld [vmem:[#allocation3 + $0x38] sm:$0xff]  ;;  %v758_v13 = vld [vmem:[#allocation3 + $0x40] sm:$0xff] }
 0x3dc   :  { %v786_v0 = vmul.f32 %v770_v62, %v754_v61  ;;  %v787_v10 = vmul.f32 %v771_v2, %v755_v1  ;;  %v772_v5 = vld [vmem:[#allocation4 + $0x30] sm:$0xff]  ;;  %v773_v9 = vld [vmem:[#allocation4 + $0x38] sm:$0xff]  ;;  %v774_v14 = vld [vmem:[#allocation4 + $0x40] sm:$0xff] }
 0x3dd   :  { %821 = vxpose.xlu0.b32.start [1/16] %v805_v55, 128  ;;  %v808_v63 = vmul.f32 %v1383_v47, %v785_v60  ;;  %v788_v7 = vmul.f32 %v772_v5, %v756_v4  ;;  %v789_v12 = vmul.f32 %v773_v9, %v757_v8  ;;  %v790_v42 = vmul.f32 %v774_v14, %v758_v13  ;;  %v759_v40 = vld [vmem:[#allocation3 + $0x48] sm:$0xff]  ;;  %v760_v45 = vld [vmem:[#allocation3 + $0x50] sm:$0xff]  ;;  %v761_v19 = vld [vmem:[#allocation3 + $0x58] sm:$0xff] }
 0x3de   :  { %v809_v3 = vmul.f32 %v1383_v47, %v786_v0  ;;  %v810_v6 = vmul.f32 %v1383_v47, %v787_v10  ;;  %v775_v43 = vld [vmem:[#allocation4 + $0x48] sm:$0xff]  ;;  %v776_v46 = vld [vmem:[#allocation4 + $0x50] sm:$0xff]  ;;  %v777_v20 = vld [vmem:[#allocation4 + $0x58] sm:$0xff] }
 0x3df   :  { %v811_v11 = vmul.f32 %v1383_v47, %v788_v7  ;;  %v812_v15 = vmul.f32 %v1383_v47, %v789_v12  ;;  %v813_v16 = vmul.f32 %v1383_v47, %v790_v42  ;;  %v791_v44 = vmul.f32 %v775_v43, %v759_v40  ;;  %v762_v23 = vld [vmem:[#allocation3 + $0x60] sm:$0xff]  ;;  %v763_v27 = vld [vmem:[#allocation3 + $0x68] sm:$0xff]  ;;  %v764_v31 = vld [vmem:[#allocation3 + $0x70] sm:$0xff] }
 0x3e0   :  { %v792_v18 = vmul.f32 %v776_v46, %v760_v45  ;;  %v793_v22 = vmul.f32 %v777_v20, %v761_v19  ;;  %v778_v24 = vld [vmem:[#allocation4 + $0x60] sm:$0xff]  ;;  %v779_v28 = vld [vmem:[#allocation4 + $0x68] sm:$0xff]  ;;  %v780_v32 = vld [vmem:[#allocation4 + $0x70] sm:$0xff]  ;;  %v875_v43 = vstv %s874_s9 }
 0x3e1   :  { %822 = vxpose.xlu0.b32.cont [2/16] %v806_v56, 128  ;;  %v814_v17 = vmul.f32 %v1383_v47, %v791_v44  ;;  %v794_v26 = vmul.f32 %v778_v24, %v762_v23  ;;  %v795_v30 = vmul.f32 %v779_v28, %v763_v27  ;;  %v796_v34 = vmul.f32 %v780_v32, %v764_v31  ;;  %v765_v35 = vld [vmem:[#allocation3 + $0x78] sm:$0xff] }
 0x3e2   :  { %v815_v21 = vmul.f32 %v1383_v47, %v792_v18  ;;  %v816_v25 = vmul.f32 %v1383_v47, %v793_v22  ;;  %v781_v36 = vld [vmem:[#allocation4 + $0x78] sm:$0xff] }
 0x3e3   :  { %v817_v29 = vmul.f32 %v1383_v47, %v794_v26  ;;  %v818_v33 = vmul.f32 %v1383_v47, %v795_v30  ;;  %v819_v37 = vmul.f32 %v1383_v47, %v796_v34  ;;  %v797_v38 = vmul.f32 %v781_v36, %v765_v35 }
 0x3e5   :  { %823 = vxpose.xlu0.b32.cont [3/16] %v807_v52, 128  ;;  %v820_v39 = vmul.f32 %v1383_v47, %v797_v38 }
 0x3e9   :  { %824 = vxpose.xlu0.b32.cont [4/16] %v808_v63, 128 }
 0x3ed   :  { %825 = vxpose.xlu0.b32.cont [5/16] %v809_v3, 128 }
 0x3f1   :  { %826 = vxpose.xlu0.b32.cont [6/16] %v810_v6, 128 }
 0x3f5   :  { %827 = vxpose.xlu0.b32.cont [7/16] %v811_v11, 128 }
 0x3f9   :  { %828 = vxpose.xlu0.b32.cont [8/16] %v812_v15, 128 }
 0x3fd   :  { %829 = vxpose.xlu0.b32.cont [9/16] %v813_v16, 128 }
 0x401   :  { %830 = vxpose.xlu0.b32.cont [10/16] %v814_v17, 128 }
 0x405   :  { %831 = vxpose.xlu0.b32.cont [11/16] %v815_v21, 128 }
 0x409   :  { %832 = vxpose.xlu0.b32.cont [12/16] %v816_v25, 128 }
 0x40d   :  { %833 = vxpose.xlu0.b32.cont [13/16] %v817_v29, 128 }
 0x411   :  { %834 = vxpose.xlu0.b32.cont [14/16] %v818_v33, 128 }
 0x415   :  { %835 = vxpose.xlu0.b32.cont [15/16] %v819_v37, 128 }
 0x419   :  { %836 = vxpose.xlu0.b32.end [16/16] %v820_v39, 128 }
 0x459   :  { %v837_v41 = vpop.trf.xlu0 }
 0x45d   :  { %v838_v48 = vpop.trf.xlu0 }
 0x45e   :  { %v853_v57 = vadd.f32 %v838_v48, %v837_v41 }
 0x461   :  { %v839_v49 = vpop.trf.xlu0 }
 0x462   :  { %v854_v58 = vadd.f32 %v853_v57, %v839_v49 }
 0x465   :  { %v840_v50 = vpop.trf.xlu0 }
 0x466   :  { %v855_v52 = vadd.f32 %v854_v58, %v840_v50 }
 0x469   :  { %v841_v51 = vpop.trf.xlu0 }
 0x46a   :  { %v856_v60 = vadd.f32 %v855_v52, %v841_v51 }
 0x46d   :  { %v842_v53 = vpop.trf.xlu0 }
 0x46e   :  { %v857_v62 = vadd.f32 %v856_v60, %v842_v53 }
 0x471   :  { %v843_v54 = vpop.trf.xlu0 }
 0x472   :  { %v858_v63 = vadd.f32 %v857_v62, %v843_v54 }
 0x475   :  { %v844_v55 = vpop.trf.xlu0 }
 0x476   :  { %v859_v47 = vadd.f32 %v858_v63, %v844_v55 }
 0x479   :  { %v845_v56 = vpop.trf.xlu0 }
 0x47a   :  { %v860_v1 = vadd.f32 %v859_v47, %v845_v56 }
 0x47d   :  { %v846_v59 = vpop.trf.xlu0 }
 0x47e   :  { %v861_v3 = vadd.f32 %v860_v1, %v846_v59 }
 0x481   :  { %v847_v61 = vpop.trf.xlu0 }
 0x482   :  { %v862_v10 = vadd.f32 %v861_v3, %v847_v61 }
 0x485   :  { %v848_v0 = vpop.trf.xlu0 }
 0x486   :  { %v863_v5 = vadd.f32 %v862_v10, %v848_v0 }
 0x489   :  { %v849_v2 = vpop.trf.xlu0 }
 0x48a   :  { %v864_v6 = vadd.f32 %v863_v5, %v849_v2 }
 0x48d   :  { %v850_v4 = vpop.trf.xlu0 }
 0x48e   :  { %v865_v8 = vadd.f32 %v864_v6, %v850_v4 }
 0x491   :  { %v851_v7 = vpop.trf.xlu0 }
 0x492   :  { %v866_v9 = vadd.f32 %v865_v8, %v851_v7 }
 0x495   :  { %v852_v11 = vpop.trf.xlu0 }
 0x496   :  { %v867_v12 = vadd.f32 %v866_v9, %v852_v11 }
 0x498   :  { %v868_v13 = vrot.slane %v867_v12, 4 }
 0x49a   :  { %v869_v14 = vadd.f32 %v868_v13, %v867_v12 }
 0x49c   :  { %v870_v15 = vrot.slane %v869_v14, 2 }
 0x49e   :  { %v871_v42 = vadd.f32 %v870_v15, %v869_v14 }
 0x4a0   :  { %v872_v40 = vrot.slane %v871_v42, 1 }
 0x4a2   :  { %v873_v16 = vadd.f32 %v872_v40, %v871_v42 }
 0x4a4   :  { %v876_v44 = vadd.f32 %v875_v43, %v873_v16 }
 0x4a6   :  { %v934_v45 = vmul.f32 -1.442695, %v876_v44 }
 0x4a8   :  { %1157 = vpow2.f32 %v934_v45 }
 0x4b5   :  { %v1158_v46 = vpop.eup %1157 }
 0x4b6   :  { %v880_v17 = vadd.f32 1.0, %v1158_v46 }
 0x4b8   :  { %1159 = vrcp.f32 %v880_v17 }
 0x4c5   :  { %v1160_v18 = vpop.eup %1159 }
 0x4c6   :  { %883 = vst [vmem:[%s1414_s10] sm:$0x1] %v1160_v18 }
 0x4c7   :  { %888 = vsyncpa [#allocation7], 1 }
 0x4c8   :  { %889 = vsyncpa [#allocation9], 1 }

</bundles_post_ra>
